<compile_context>
chip_gen: v6e
topology: v6e:2x2x1
jax: 0.10.0
libtpu: 0.0.40
codegen_flags: <defaults>
</compile_context>

<pallas_src>
import functools

import jax
import jax.numpy as jnp
from jax.experimental import pallas as pl
from jax.experimental.pallas import tpu as pltpu

LANE = 128             # vreg lane width (last-dim tiling unit)
SUBLANE = 8            # f32 sublane height (second-last-dim tiling unit)
_MAX_BATCH_TILE = 1024  # practical cap on batch-tile rows


def _round_up(x: int, m: int) -> int:
    return ((x + m - 1) // m) * m


def _vmem_budget_bytes() -> int:
    """Usable VMEM budget, leaving headroom below physical capacity."""
    physical = None
    try:
        physical = getattr(pltpu.get_tpu_info(), "vmem_capacity_bytes", None)
    except Exception:
        physical = None
    if not physical:
        physical = 64 << 20  # conservative default: v7x per-TensorCore VMEM
    return max((int(physical) * 3) // 4, 32 << 20)


def _make_decoder_kernel(n_layers: int):
    """Fused kernel for `n_layers` (Linear -> Sigmoid) stages.

    Kernel args: x_ref, w0_ref, b0_ref, ..., o_ref.  All intermediates live in
    vregs/VMEM; only o_ref is written back.
    """

    def kernel(*refs):
        x_ref = refs[0]
        o_ref = refs[-1]
        h = x_ref[...].astype(jnp.float32)
        for layer in range(n_layers):
            w_ref = refs[1 + 2 * layer]
            b_ref = refs[2 + 2 * layer]
            # bf16 x bf16 MXU matmul with f32 accumulation; bias row-broadcast
            # and one EUP logistic op, both in f32.
            y = jnp.dot(h.astype(w_ref.dtype), w_ref[...],
                        preferred_element_type=jnp.float32)
            y = y + b_ref[...]          # (1, out) broadcasts over rows
            h = jax.nn.sigmoid(y)       # running activation stays f32
        o_ref[...] = h.astype(o_ref.dtype)

    return kernel


def decoder_forward(x: jax.Array, params, *,
                    compute_dtype=jnp.bfloat16,
                    single_buffer_weights: bool = True,
                    pad_features_to_lanes: bool = True) -> jax.Array:
    """Fused forward pass: sequential (Linear -> Sigmoid) layers, one kernel.

    x: (B, latent_dim) f32
    params: sequence of (w, b) with w: (in, out) f32, b: (1, out) f32
    """
    params = tuple(params)
    n_layers = len(params)
    B, latent_dim = x.shape
    out_dim = params[-1][0].shape[1]
    x = x.astype(jnp.float32)

    # ---- 1. pad feature dims to the 128-lane width & cast weights to bf16 --
    # Padded weight rows/cols and bias entries are zero, so the padded hidden
    # units (sigmoid(0)=0.5) never contribute to real outputs; the padded
    # output columns are sliced off below.
    padded_params = []
    feat_dims = []
    prev_pad = latent_dim
    for (w, b) in params:
        d_in, d_out = w.shape
        out_pad = _round_up(d_out, LANE) if pad_features_to_lanes else d_out
        w_p = jnp.zeros((prev_pad, out_pad), compute_dtype)
        w_p = w_p.at[:d_in, :d_out].set(w.astype(compute_dtype))
        b_p = jnp.zeros((1, out_pad), jnp.float32)
        b_p = b_p.at[:, :d_out].set(jnp.reshape(b, (1, d_out)).astype(jnp.float32))
        padded_params.append((w_p, b_p))
        feat_dims.append(out_pad)
        prev_pad = out_pad
    out_pad = feat_dims[-1]
    max_feat = max(feat_dims)

    # ---- 2. VMEM accounting and batch-tile selection ------------------------
    vmem_budget = _vmem_budget_bytes()
    w_buffers = 1 if single_buffer_weights else 2
    weight_bytes = w_buffers * sum(
        w.size * w.dtype.itemsize + b.size * b.dtype.itemsize
        for (w, b) in padded_params)
    # Per-row activation bytes: double-buffered input/output tiles plus a
    # generous allowance for live f32 intermediates inside the layer loop.
    per_row = 4 * (2 * latent_dim + 2 * out_pad + 4 * max_feat)
    avail = vmem_budget - weight_bytes - (2 << 20)
    tb = max(avail // per_row, SUBLANE)
    tb = min(int(tb), _MAX_BATCH_TILE)
    tb = max((tb // SUBLANE) * SUBLANE, SUBLANE)
    tb = min(tb, _round_up(B, SUBLANE))
    # Guarantee >= 2 parallel grid steps when the batch allows it, so both
    # TensorCores on v7x get work.
    if B >= 2 * SUBLANE and _round_up(B, SUBLANE) // tb < 2:
        tb = _round_up((B + 1) // 2, SUBLANE)
    b_pad = _round_up(B, tb)
    grid = (b_pad // tb,)

    if b_pad != B:
        x = jnp.pad(x, ((0, b_pad - B), (0, 0)))

    # ---- 3. BlockSpecs -------------------------------------------------------
    in_specs = [pl.BlockSpec((tb, latent_dim), lambda i: (i, 0))]
    for (w, b) in padded_params:
        if single_buffer_weights:
            # Constant index_map + single buffer: resident, no double-buffer tax.
            in_specs.append(pl.BlockSpec(w.shape, lambda i: (0, 0),
                                         pipeline_mode=pl.Buffered(1)))
            in_specs.append(pl.BlockSpec(b.shape, lambda i: (0, 0),
                                         pipeline_mode=pl.Buffered(1)))
        else:
            in_specs.append(pl.BlockSpec(w.shape, lambda i: (0, 0)))
            in_specs.append(pl.BlockSpec(b.shape, lambda i: (0, 0)))
    out_specs = pl.BlockSpec((tb, out_pad), lambda i: (i, 0))

    # ---- 4. cost estimate & VMEM limit --------------------------------------
    flops = 2 * b_pad * sum(w.shape[0] * w.shape[1] for (w, _) in padded_params)
    transcendentals = b_pad * sum(feat_dims)
    bytes_accessed = (4 * b_pad * (latent_dim + out_pad)
                      + sum(w.size * w.dtype.itemsize + b.size * b.dtype.itemsize
                            for (w, b) in padded_params))
    needed_vmem = weight_bytes + tb * per_row
    vmem_limit = int(min(max(2 * needed_vmem + (4 << 20), 32 << 20), vmem_budget))

    flat_args = [x]
    for (w, b) in padded_params:
        flat_args.append(w)
        flat_args.append(b)

    out = pl.pallas_call(
        _make_decoder_kernel(n_layers),
        out_shape=jax.ShapeDtypeStruct((b_pad, out_pad), jnp.float32),
        grid_spec=pltpu.PrefetchScalarGridSpec(
            num_scalar_prefetch=0,
            grid=grid,
            in_specs=in_specs,
            out_specs=out_specs,
        ),
        compiler_params=pltpu.CompilerParams(
            dimension_semantics=("parallel",),  # batch tiles are independent
            vmem_limit_bytes=vmem_limit,
        ),
        cost_estimate=pl.CostEstimate(
            flops=flops,
            transcendentals=transcendentals,
            bytes_accessed=bytes_accessed,
        ),
    )(*flat_args)

    return out[:B, :out_dim]


def init_decoder_params(key, input_dim, hidden_dims, latent_dim):
    """Deterministic parameter init mirroring the PyTorch module's shapes.

    architecture = [latent_dim] + hidden_dims + [input_dim]; one Linear per
    consecutive pair. Uses uniform(-1/sqrt(fan_in), 1/sqrt(fan_in)) like
    nn.Linear's default init (values themselves are synthetic/deterministic).
    Weights stored as (in, out) = transpose of PyTorch's (out, in) layout.
    """
    architecture = [latent_dim] + list(hidden_dims) + [input_dim]
    params = []
    for in_dim, out_dim in zip(architecture[:-1], architecture[1:]):
        key, kw, kb = jax.random.split(key, 3)
        bound = 1.0 / jnp.sqrt(jnp.float32(in_dim))
        w = jax.random.uniform(kw, (in_dim, out_dim), jnp.float32, -bound, bound)
        b = jax.random.uniform(kb, (1, out_dim), jnp.float32, -bound, bound)
        params.append((w, b))
    return tuple(params)


def _reference_forward(x, params):
    h = x
    for (w, b) in params:
        h = jax.nn.sigmoid(h @ w + jnp.reshape(b, (1, -1)))
    return h


if __name__ == "__main__":
    # Small shapes consistent with the module: Decoder(input_dim=64,
    # hidden_dims=[32, 16], latent_dim=8), batch of 8 latent samples.
    input_dim = 64
    hidden_dims = [32, 16]
    latent_dim = 8
    batch = 8

    key = jax.random.PRNGKey(0)
    key, kx = jax.random.split(key)
    x = jax.random.normal(kx, (batch, latent_dim), dtype=jnp.float32)
    params = init_decoder_params(key, input_dim, hidden_dims, latent_dim)

    def run(single_buffer_weights: bool):
        fwd = jax.jit(functools.partial(
            decoder_forward, single_buffer_weights=single_buffer_weights))
        return jax.block_until_ready(fwd(x, params))

    try:
        out = run(True)
    except Exception:
        # Fallback: if this jax build rejects single-buffered weight specs
        # (pl.Buffered(1)), double-buffering is functionally identical.
        out = run(False)

    # sanity check against a pure-JAX f32 reference; bf16 weights / bf16
    # matmul inputs -> relaxed tolerance (sigmoid keeps the error ~1e-3 here).
    ref = _reference_forward(x, params)
    assert out.shape == (batch, input_dim), out.shape
    assert jnp.allclose(out, ref, atol=2e-2, rtol=0.0), "mismatch vs reference"

    print("KERNEL_OK")
</pallas_src>

<mosaic_0001>
module attributes {stable_mosaic.version = 11 : i64} {
  func.func @kernel(%arg0: i32, %arg1: memref<8x8xf32, #tpu.memory_space<vmem>>, %arg2: memref<8x128xbf16, #tpu.memory_space<vmem>>, %arg3: memref<1x128xf32, #tpu.memory_space<vmem>>, %arg4: memref<128x128xbf16, #tpu.memory_space<vmem>>, %arg5: memref<1x128xf32, #tpu.memory_space<vmem>>, %arg6: memref<128x128xbf16, #tpu.memory_space<vmem>>, %arg7: memref<1x128xf32, #tpu.memory_space<vmem>>, %arg8: memref<8x128xf32, #tpu.memory_space<vmem>>) attributes {dimension_semantics = [#tpu.dimension_semantics<parallel>], iteration_bounds = array<i64: 1>, scalar_prefetch = 0 : i64, scratch_operands = 0 : i64, tpu.core_type = #tpu.core_type<tc>, window_params = [{transform_indices = @transform_0, window_bounds = array<i64: 8, 8>}, {pipeline_mode = #tpu.pipeline_mode<synchronous>, transform_indices = @transform_1, window_bounds = array<i64: 8, 128>}, {pipeline_mode = #tpu.pipeline_mode<synchronous>, transform_indices = @transform_2, window_bounds = array<i64: 1, 128>}, {pipeline_mode = #tpu.pipeline_mode<synchronous>, transform_indices = @transform_3, window_bounds = array<i64: 128, 128>}, {pipeline_mode = #tpu.pipeline_mode<synchronous>, transform_indices = @transform_4, window_bounds = array<i64: 1, 128>}, {pipeline_mode = #tpu.pipeline_mode<synchronous>, transform_indices = @transform_5, window_bounds = array<i64: 128, 128>}, {pipeline_mode = #tpu.pipeline_mode<synchronous>, transform_indices = @transform_6, window_bounds = array<i64: 1, 128>}, {transform_indices = @transform_7, window_bounds = array<i64: 8, 128>}]} {
    %c0 = arith.constant 0 : index
    %c0_0 = arith.constant 0 : index
    %0 = vector.load %arg1[%c0, %c0_0] : memref<8x8xf32, #tpu.memory_space<vmem>>, vector<8x8xf32>
    %1 = arith.truncf %0 : vector<8x8xf32> to vector<8x8xbf16>
    %c0_1 = arith.constant 0 : index
    %c0_2 = arith.constant 0 : index
    %2 = vector.load %arg2[%c0_1, %c0_2] : memref<8x128xbf16, #tpu.memory_space<vmem>>, vector<8x128xbf16>
    %cst = arith.constant dense<0.000000e+00> : vector<8x128xf32>
    %3 = tpu.matmul %1, %2, %cst {dimension_numbers = #tpu.dot_dimension_numbers<[1], [0], [0], [1], [0, 0, 1, 1], [], []>} : vector<8x8xbf16>, vector<8x128xbf16>, vector<8x128xf32> -> vector<8x128xf32>
    %c0_3 = arith.constant 0 : index
    %c0_4 = arith.constant 0 : index
    %4 = vector.load %arg3[%c0_3, %c0_4] : memref<1x128xf32, #tpu.memory_space<vmem>>, vector<1x128xf32>
    %5 = vector.broadcast %4 : vector<1x128xf32> to vector<8x128xf32>
    %6 = arith.addf %3, %5 : vector<8x128xf32>
    %7 = arith.negf %6 : vector<8x128xf32>
    %8 = math.exp %7 : vector<8x128xf32>
    %cst_5 = arith.constant 1.000000e+00 : f32
    %9 = vector.broadcast %cst_5 : f32 to vector<8x128xf32>
    %10 = arith.addf %9, %8 : vector<8x128xf32>
    %11 = arith.divf %9, %10 : vector<8x128xf32>
    %12 = arith.truncf %11 : vector<8x128xf32> to vector<8x128xbf16>
    %c0_6 = arith.constant 0 : index
    %c0_7 = arith.constant 0 : index
    %13 = vector.load %arg4[%c0_6, %c0_7] : memref<128x128xbf16, #tpu.memory_space<vmem>>, vector<128x128xbf16>
    %cst_8 = arith.constant dense<0.000000e+00> : vector<8x128xf32>
    %14 = tpu.matmul %12, %13, %cst_8 {dimension_numbers = #tpu.dot_dimension_numbers<[1], [0], [0], [1], [0, 0, 1, 1], [], []>} : vector<8x128xbf16>, vector<128x128xbf16>, vector<8x128xf32> -> vector<8x128xf32>
    %c0_9 = arith.constant 0 : index
    %c0_10 = arith.constant 0 : index
    %15 = vector.load %arg5[%c0_9, %c0_10] : memref<1x128xf32, #tpu.memory_space<vmem>>, vector<1x128xf32>
    %16 = vector.broadcast %15 : vector<1x128xf32> to vector<8x128xf32>
    %17 = arith.addf %14, %16 : vector<8x128xf32>
    %18 = arith.negf %17 : vector<8x128xf32>
    %19 = math.exp %18 : vector<8x128xf32>
    %cst_11 = arith.constant 1.000000e+00 : f32
    %20 = vector.broadcast %cst_11 : f32 to vector<8x128xf32>
    %21 = arith.addf %20, %19 : vector<8x128xf32>
    %22 = arith.divf %20, %21 : vector<8x128xf32>
    %23 = arith.truncf %22 : vector<8x128xf32> to vector<8x128xbf16>
    %c0_12 = arith.constant 0 : index
    %c0_13 = arith.constant 0 : index
    %24 = vector.load %arg6[%c0_12, %c0_13] : memref<128x128xbf16, #tpu.memory_space<vmem>>, vector<128x128xbf16>
    %cst_14 = arith.constant dense<0.000000e+00> : vector<8x128xf32>
    %25 = tpu.matmul %23, %24, %cst_14 {dimension_numbers = #tpu.dot_dimension_numbers<[1], [0], [0], [1], [0, 0, 1, 1], [], []>} : vector<8x128xbf16>, vector<128x128xbf16>, vector<8x128xf32> -> vector<8x128xf32>
    %c0_15 = arith.constant 0 : index
    %c0_16 = arith.constant 0 : index
    %26 = vector.load %arg7[%c0_15, %c0_16] : memref<1x128xf32, #tpu.memory_space<vmem>>, vector<1x128xf32>
    %27 = vector.broadcast %26 : vector<1x128xf32> to vector<8x128xf32>
    %28 = arith.addf %25, %27 : vector<8x128xf32>
    %29 = arith.negf %28 : vector<8x128xf32>
    %30 = math.exp %29 : vector<8x128xf32>
    %cst_17 = arith.constant 1.000000e+00 : f32
    %31 = vector.broadcast %cst_17 : f32 to vector<8x128xf32>
    %32 = arith.addf %31, %30 : vector<8x128xf32>
    %33 = arith.divf %31, %32 : vector<8x128xf32>
    %c0_18 = arith.constant 0 : index
    %c0_19 = arith.constant 0 : index
    %34 = vector.load %arg8[%c0_18, %c0_19] : memref<8x128xf32, #tpu.memory_space<vmem>>, vector<8x128xf32>
    tpu.vector_store %arg8[%c0_18, %c0_19], %33 {strides = array<i32>} : memref<8x128xf32, #tpu.memory_space<vmem>>, vector<8x128xf32>,
    return
  }
  func.func @transform_0(%arg0: i32) -> (i32, i32) {
    %c0_i32 = arith.constant 0 : i32
    %c0_i32_0 = arith.constant 0 : i32
    return %arg0, %c0_i32 : i32, i32
  }
  func.func @transform_1(%arg0: i32) -> (i32, i32) {
    %c0_i32 = arith.constant 0 : i32
    %c0_i32_0 = arith.constant 0 : i32
    %c0_i32_1 = arith.constant 0 : i32
    return %c0_i32, %c0_i32_0 : i32, i32
  }
  func.func @transform_2(%arg0: i32) -> (i32, i32) {
    %c0_i32 = arith.constant 0 : i32
    %c0_i32_0 = arith.constant 0 : i32
    %c0_i32_1 = arith.constant 0 : i32
    return %c0_i32, %c0_i32_0 : i32, i32
  }
  func.func @transform_3(%arg0: i32) -> (i32, i32) {
    %c0_i32 = arith.constant 0 : i32
    %c0_i32_0 = arith.constant 0 : i32
    %c0_i32_1 = arith.constant 0 : i32
    return %c0_i32, %c0_i32_0 : i32, i32
  }
  func.func @transform_4(%arg0: i32) -> (i32, i32) {
    %c0_i32 = arith.constant 0 : i32
    %c0_i32_0 = arith.constant 0 : i32
    %c0_i32_1 = arith.constant 0 : i32
    return %c0_i32, %c0_i32_0 : i32, i32
  }
  func.func @transform_5(%arg0: i32) -> (i32, i32) {
    %c0_i32 = arith.constant 0 : i32
    %c0_i32_0 = arith.constant 0 : i32
    %c0_i32_1 = arith.constant 0 : i32
    return %c0_i32, %c0_i32_0 : i32, i32
  }
  func.func @transform_6(%arg0: i32) -> (i32, i32) {
    %c0_i32 = arith.constant 0 : i32
    %c0_i32_0 = arith.constant 0 : i32
    %c0_i32_1 = arith.constant 0 : i32
    return %c0_i32, %c0_i32_0 : i32, i32
  }
  func.func @transform_7(%arg0: i32) -> (i32, i32) {
    %c0_i32 = arith.constant 0 : i32
    %c0_i32_0 = arith.constant 0 : i32
    return %arg0, %c0_i32 : i32, i32
  }
}

module attributes {stable_mosaic.version = 11 : i64} {
  func.func @kernel(%arg0: i32, %arg1: memref<8x8xf32, #tpu.memory_space<vmem>>, %arg2: memref<8x128xbf16, #tpu.memory_space<vmem>>, %arg3: memref<1x128xf32, #tpu.memory_space<vmem>>, %arg4: memref<128x128xbf16, #tpu.memory_space<vmem>>, %arg5: memref<1x128xf32, #tpu.memory_space<vmem>>, %arg6: memref<128x128xbf16, #tpu.memory_space<vmem>>, %arg7: memref<1x128xf32, #tpu.memory_space<vmem>>, %arg8: memref<8x128xf32, #tpu.memory_space<vmem>>) attributes {dimension_semantics = [#tpu.dimension_semantics<parallel>], iteration_bounds = array<i64: 1>, scalar_prefetch = 0 : i64, scratch_operands = 0 : i64, tpu.core_type = #tpu.core_type<tc>, window_params = [{transform_indices = @transform_0, window_bounds = array<i64: 8, 8>}, {pipeline_mode = #tpu.pipeline_mode<synchronous>, transform_indices = @transform_1, window_bounds = array<i64: 8, 128>}, {pipeline_mode = #tpu.pipeline_mode<synchronous>, transform_indices = @transform_2, window_bounds = array<i64: 1, 128>}, {pipeline_mode = #tpu.pipeline_mode<synchronous>, transform_indices = @transform_3, window_bounds = array<i64: 128, 128>}, {pipeline_mode = #tpu.pipeline_mode<synchronous>, transform_indices = @transform_4, window_bounds = array<i64: 1, 128>}, {pipeline_mode = #tpu.pipeline_mode<synchronous>, transform_indices = @transform_5, window_bounds = array<i64: 128, 128>}, {pipeline_mode = #tpu.pipeline_mode<synchronous>, transform_indices = @transform_6, window_bounds = array<i64: 1, 128>}, {transform_indices = @transform_7, window_bounds = array<i64: 8, 128>}]} {
    %c0 = arith.constant 0 : index
    %c0_0 = arith.constant 0 : index
    %0 = vector.load %arg1[%c0, %c0_0] : memref<8x8xf32, #tpu.memory_space<vmem>>, vector<8x8xf32>
    %1 = arith.truncf %0 : vector<8x8xf32> to vector<8x8xbf16>
    %c0_1 = arith.constant 0 : index
    %c0_2 = arith.constant 0 : index
    %2 = vector.load %arg2[%c0_1, %c0_2] : memref<8x128xbf16, #tpu.memory_space<vmem>>, vector<8x128xbf16>
    %cst = arith.constant dense<0.000000e+00> : vector<8x128xf32>
    %3 = tpu.matmul %1, %2, %cst {dimension_numbers = #tpu.dot_dimension_numbers<[1], [0], [0], [1], [0, 0, 1, 1], [], []>} : vector<8x8xbf16>, vector<8x128xbf16>, vector<8x128xf32> -> vector<8x128xf32>
    %c0_3 = arith.constant 0 : index
    %c0_4 = arith.constant 0 : index
    %4 = vector.load %arg3[%c0_3, %c0_4] : memref<1x128xf32, #tpu.memory_space<vmem>>, vector<1x128xf32>
    %5 = vector.broadcast %4 : vector<1x128xf32> to vector<8x128xf32>
    %6 = arith.addf %3, %5 : vector<8x128xf32>
    %7 = arith.negf %6 : vector<8x128xf32>
    %8 = math.exp %7 : vector<8x128xf32>
    %cst_5 = arith.constant 1.000000e+00 : f32
    %9 = vector.broadcast %cst_5 : f32 to vector<8x128xf32>
    %10 = arith.addf %9, %8 : vector<8x128xf32>
    %11 = arith.divf %9, %10 : vector<8x128xf32>
    %12 = arith.truncf %11 : vector<8x128xf32> to vector<8x128xbf16>
    %c0_6 = arith.constant 0 : index
    %c0_7 = arith.constant 0 : index
    %13 = vector.load %arg4[%c0_6, %c0_7] : memref<128x128xbf16, #tpu.memory_space<vmem>>, vector<128x128xbf16>
    %cst_8 = arith.constant dense<0.000000e+00> : vector<8x128xf32>
    %14 = tpu.matmul %12, %13, %cst_8 {dimension_numbers = #tpu.dot_dimension_numbers<[1], [0], [0], [1], [0, 0, 1, 1], [], []>} : vector<8x128xbf16>, vector<128x128xbf16>, vector<8x128xf32> -> vector<8x128xf32>
    %c0_9 = arith.constant 0 : index
    %c0_10 = arith.constant 0 : index
    %15 = vector.load %arg5[%c0_9, %c0_10] : memref<1x128xf32, #tpu.memory_space<vmem>>, vector<1x128xf32>
    %16 = vector.broadcast %15 : vector<1x128xf32> to vector<8x128xf32>
    %17 = arith.addf %14, %16 : vector<8x128xf32>
    %18 = arith.negf %17 : vector<8x128xf32>
    %19 = math.exp %18 : vector<8x128xf32>
    %cst_11 = arith.constant 1.000000e+00 : f32
    %20 = vector.broadcast %cst_11 : f32 to vector<8x128xf32>
    %21 = arith.addf %20, %19 : vector<8x128xf32>
    %22 = arith.divf %20, %21 : vector<8x128xf32>
    %23 = arith.truncf %22 : vector<8x128xf32> to vector<8x128xbf16>
    %c0_12 = arith.constant 0 : index
    %c0_13 = arith.constant 0 : index
    %24 = vector.load %arg6[%c0_12, %c0_13] : memref<128x128xbf16, #tpu.memory_space<vmem>>, vector<128x128xbf16>
    %cst_14 = arith.constant dense<0.000000e+00> : vector<8x128xf32>
    %25 = tpu.matmul %23, %24, %cst_14 {dimension_numbers = #tpu.dot_dimension_numbers<[1], [0], [0], [1], [0, 0, 1, 1], [], []>} : vector<8x128xbf16>, vector<128x128xbf16>, vector<8x128xf32> -> vector<8x128xf32>
    %c0_15 = arith.constant 0 : index
    %c0_16 = arith.constant 0 : index
    %26 = vector.load %arg7[%c0_15, %c0_16] : memref<1x128xf32, #tpu.memory_space<vmem>>, vector<1x128xf32>
    %27 = vector.broadcast %26 : vector<1x128xf32> to vector<8x128xf32>
    %28 = arith.addf %25, %27 : vector<8x128xf32>
    %29 = arith.negf %28 : vector<8x128xf32>
    %30 = math.exp %29 : vector<8x128xf32>
    %cst_17 = arith.constant 1.000000e+00 : f32
    %31 = vector.broadcast %cst_17 : f32 to vector<8x128xf32>
    %32 = arith.addf %31, %30 : vector<8x128xf32>
    %33 = arith.divf %31, %32 : vector<8x128xf32>
    %c0_18 = arith.constant 0 : index
    %c0_19 = arith.constant 0 : index
    %34 = vector.load %arg8[%c0_18, %c0_19] : memref<8x128xf32, #tpu.memory_space<vmem>>, vector<8x128xf32>
    tpu.vector_store %arg8[%c0_18, %c0_19], %33 {strides = array<i32>} : memref<8x128xf32, #tpu.memory_space<vmem>>, vector<8x128xf32>,
    return
  }
  func.func @transform_0(%arg0: i32) -> (i32, i32) {
    %c0_i32 = arith.constant 0 : i32
    %c0_i32_0 = arith.constant 0 : i32
    return %arg0, %c0_i32 : i32, i32
  }
  func.func @transform_1(%arg0: i32) -> (i32, i32) {
    %c0_i32 = arith.constant 0 : i32
    %c0_i32_0 = arith.constant 0 : i32
    %c0_i32_1 = arith.constant 0 : i32
    return %c0_i32, %c0_i32_0 : i32, i32
  }
  func.func @transform_2(%arg0: i32) -> (i32, i32) {
    %c0_i32 = arith.constant 0 : i32
    %c0_i32_0 = arith.constant 0 : i32
    %c0_i32_1 = arith.constant 0 : i32
    return %c0_i32, %c0_i32_0 : i32, i32
  }
  func.func @transform_3(%arg0: i32) -> (i32, i32) {
    %c0_i32 = arith.constant 0 : i32
    %c0_i32_0 = arith.constant 0 : i32
    %c0_i32_1 = arith.constant 0 : i32
    return %c0_i32, %c0_i32_0 : i32, i32
  }
  func.func @transform_4(%arg0: i32) -> (i32, i32) {
    %c0_i32 = arith.constant 0 : i32
    %c0_i32_0 = arith.constant 0 : i32
    %c0_i32_1 = arith.constant 0 : i32
    return %c0_i32, %c0_i32_0 : i32, i32
  }
  func.func @transform_5(%arg0: i32) -> (i32, i32) {
    %c0_i32 = arith.constant 0 : i32
    %c0_i32_0 = arith.constant 0 : i32
    %c0_i32_1 = arith.constant 0 : i32
    return %c0_i32, %c0_i32_0 : i32, i32
  }
  func.func @transform_6(%arg0: i32) -> (i32, i32) {
    %c0_i32 = arith.constant 0 : i32
    %c0_i32_0 = arith.constant 0 : i32
    %c0_i32_1 = arith.constant 0 : i32
    return %c0_i32, %c0_i32_0 : i32, i32
  }
  func.func @transform_7(%arg0: i32) -> (i32, i32) {
    %c0_i32 = arith.constant 0 : i32
    %c0_i32_0 = arith.constant 0 : i32
    return %arg0, %c0_i32 : i32, i32
  }
}

</mosaic_0001>

<bundles_post_ra>
// kernel: decoder_forward.1
= control target key start
LH: loop header
LB: loop body
LE: loop exit
PB: predicated region body
PF: predicated region fallthrough
CT: control target
= control target key end

     0   :  { %vm42_vm0 = vcmask 1043456   ;;  %v485_v2 = vmov 0.0   ;;  %vm486_vm1 = vmmov 0   ;;  %vm38_vm2 = vcmask 64512   ;;  %s614_s0 = inlined_call_operand.vmem [shape: f32[8,8], index: 0, kind: input, shape index: {}]   ;;  %s615_s1 = inlined_call_operand.vmem [shape: bf16[8,128], index: 1, kind: input, shape index: {}]   ;;  %s616_s2 = inlined_call_operand.vmem [shape: f32[1,128], index: 2, kind: input, shape index: {}]   ;;  %s617_s3 = inlined_call_operand.vmem [shape: bf16[128,128], index: 3, kind: input, shape index: {}]   ;;  %s618_s4 = inlined_call_operand.vmem [shape: f32[1,128], index: 4, kind: input, shape index: {}]   ;;  %s619_s5 = inlined_call_operand.vmem [shape: bf16[128,128], index: 5, kind: input, shape index: {}]   ;;  %s620_s6 = inlined_call_operand.vmem [shape: f32[1,128], index: 6, kind: input, shape index: {}]   ;;  %s621_s7 = inlined_call_operand.hbm [shape: f32[8,128], index: 7, kind: output, shape index: {}]  }
   0x1   :  { %v30_v0 = vld [vmem:[%s615_s1] sm:$0xf]  ;;  %386 = vmatprep.subr.bf16.mxu0 %v485_v2  ;;  %388 = vmatprep.mubr.msk.bf16.mxu0 %vm486_vm1, %v485_v2 }
   0x2   :  { %v28_v1 = vld [vmem:[%s614_s0] sm:$0xff]  ;;  %v44_v3 = vsel %vm42_vm0, %v30_v0, 0  ;;  %392 = vmatprep.subr.bf16.mxu1 %v485_v2  ;;  %408 = vmatprep.mubr.msk.bf16.mxu1 %vm486_vm1, %v485_v2 }
   0x3   :  { %v29_v4 = vpack.c.bf16 %v28_v1, %v28_v1  ;;  %387 = vmatpush3.bf16.msra.mxu0 %v44_v3 }
   0x4   :  { %412 = vmatprep.subr.bf16.mxu0 %v485_v2 }
   0x6   :  { %389 = vmatmul.mubr.msk.bf16.vlgmr.msra.gmra.mxu0 %vm38_vm2, %v29_v4 }
   0x7   :  { %428 = vmatprep.mubr.msk.bf16.mxu0 %vm486_vm1, %v485_v2 }
   0x8   :  { %12 = vsyncpa [#allocation3], 0  ;;  %v435_v5 = vld [vmem:[%s617_s3 + $0x38] sm:$0xff]   ;;  %v436_v6 = vld [vmem:[%s617_s3 + $0x30] sm:$0xff]  }
   0x9   :  { %393 = vmatpush3.bf16.msra.mxu1 %v435_v5  ;;  %v437_v7 = vld [vmem:[%s617_s3 + $0x28] sm:$0xff]   ;;  %v438_v8 = vld [vmem:[%s617_s3 + $0x20] sm:$0xff]   ;;  %v439_v9 = vld [vmem:[%s617_s3 + $0x18] sm:$0xff]  }
   0xa   :  { %394 = vmatprep.subr.bf16.mxu1 %v485_v2  ;;  %v440_v10 = vld [vmem:[%s617_s3 + $0x10] sm:$0xff]   ;;  %v441_v11 = vld [vmem:[%s617_s3 + $0x8] sm:$0xff]   ;;  %v442_v12 = vld [vmem:[%s617_s3] sm:$0xff]  }
   0xb   :  { %v343_v13 = vld [vmem:[%s616_s2] ss:$0 sm:$0xff]  ;;  %v443_v24 = vld [vmem:[%s619_s5 + $0x38] sm:$0xff]   ;;  %v444_v25 = vld [vmem:[%s619_s5 + $0x30] sm:$0xff]  }
   0xc   :  { %413 = vmatpush3.bf16.msra.mxu0 %v443_v24  ;;  %v445_v26 = vld [vmem:[%s619_s5 + $0x28] sm:$0xff]   ;;  %v446_v27 = vld [vmem:[%s619_s5 + $0x20] sm:$0xff]   ;;  %v447_v28 = vld [vmem:[%s619_s5 + $0x18] sm:$0xff]  }
   0xd   :  { %395 = vmatpush3.bf16.msra.mxu1 %v436_v6  ;;  %414 = vmatprep.subr.bf16.mxu0 %v485_v2  ;;  %v448_v29 = vld [vmem:[%s619_s5 + $0x10] sm:$0xff]   ;;  %v449_v30 = vld [vmem:[%s619_s5 + $0x8] sm:$0xff]   ;;  %v450_v31 = vld [vmem:[%s619_s5] sm:$0xff]  }
   0xe   :  { %396 = vmatprep.subr.bf16.mxu1 %v485_v2  ;;  %v346_v32 = vld [vmem:[%s618_s4] ss:$0 sm:$0xff]  ;;  %s487_s4 = smov [#allocation2]  }
   0xf   :  { %v356_v43 = vld [vmem:[%s620_s6] ss:$0 sm:$0xff]  ;;  %s335_s13 = sshll.u32 %s487_s4, 4  ;;  %s336_s13 = int_to_ptr.vmem [resolvable:$true] %s335_s13 }
  0x10   :  { %415 = vmatpush3.bf16.msra.mxu0 %v444_v25  ;;  %s463_s14 = scalar_lea.vmem %s336_s13, 128  ;;  %p468_p1 = scmp.lt.s32.totalorder %s336_s13, %s336_s13 }
  0x11   :  { %397 = vmatpush3.bf16.msra.mxu1 %v437_v7  ;;  %416 = vmatprep.subr.bf16.mxu0 %v485_v2  ;;  %p464_p0 = scmp.ne.s32.totalorder %s336_s13, %s463_s14  ;;  %p469_p2 = scmp.lt.s32.totalorder %s463_s14, %s463_s14 }
  0x12   :  { %398 = vmatprep.subr.bf16.mxu1 %v485_v2 }
  0x13   :  { %p470_p3 = por %p469_p2, %p468_p1 }
  0x14   :  { %417 = vmatpush3.bf16.msra.mxu0 %v445_v26 }
  0x15   :  { %399 = vmatpush3.bf16.msra.mxu1 %v438_v8  ;;  %418 = vmatprep.subr.bf16.mxu0 %v485_v2  ;;  %p471_p4 = pnand %p470_p3, %p464_p0 }
  0x16   :  { %400 = vmatprep.subr.bf16.mxu1 %v485_v2 }
  0x18   :  { %419 = vmatpush3.bf16.msra.mxu0 %v446_v27 }
  0x19   :  { %401 = vmatpush3.bf16.msra.mxu1 %v439_v9  ;;  %420 = vmatprep.subr.bf16.mxu0 %v485_v2 }
  0x1a   :  { %402 = vmatprep.subr.bf16.mxu1 %v485_v2 }
  0x1c   :  { %421 = vmatpush3.bf16.msra.mxu0 %v447_v28 }
  0x1d   :  { %403 = vmatpush3.bf16.msra.mxu1 %v440_v10  ;;  %422 = vmatprep.subr.bf16.mxu0 %v485_v2 }
  0x1e   :  { %404 = vmatprep.subr.bf16.mxu1 %v485_v2 }
  0x20   :  { %423 = vmatpush3.bf16.msra.mxu0 %v448_v29 }
  0x21   :  { %405 = vmatpush3.bf16.msra.mxu1 %v441_v11  ;;  %424 = vmatprep.subr.bf16.mxu0 %v485_v2 }
  0x22   :  { %406 = vmatprep.subr.bf16.mxu1 %v485_v2 }
  0x24   :  { %425 = vmatpush3.bf16.msra.mxu0 %v449_v30 }
  0x25   :  { %407 = vmatpush3.bf16.msra.mxu1 %v442_v12  ;;  %426 = vmatprep.subr.bf16.mxu0 %v485_v2 }
  0x28   :  { %427 = vmatpush3.bf16.msra.mxu0 %v450_v31 }
  0xc6   :  { %v80_v14 = vpop.f32.mrf.mxu0 }
  0xc7   :  { %v81_v15 = vadd.f32 %v343_v13, %v80_v14 }
  0xc8   :  { %v390_v16 = vpop.f32.mrf.mxu0 }
  0xc9   :  { %v345_v17 = vmul.f32 -1.442695, %v81_v15 }
  0xca   :  { %v83_v18 = vpop.f32.mrf.mxu0 }
  0xcb   :  { %451 = vpow2.f32 %v345_v17 }
  0xcc   :  { %v391_v19 = vpop.f32.mrf.mxu0 }
  0xd8   :  { %v452_v20 = vpop.eup %451 }
  0xd9   :  { %v89_v21 = vadd.f32 1.0, %v452_v20 }
  0xdb   :  { %453 = vrcp.f32 %v89_v21 }
  0xe8   :  { %v454_v22 = vpop.eup %453 }
  0xe9   :  { %v92_v23 = vpack.c.bf16 %v454_v22, %v454_v22 }
  0xeb   :  { %409 = vmatmul.mubr.bf16.vlgmr.msra.gmra.mxu1 %v92_v23 }
 0x1ab   :  { %v198_v33 = vpop.f32.mrf.mxu1 }
 0x1ac   :  { %v199_v34 = vadd.f32 %v346_v32, %v198_v33 }
 0x1ad   :  { %v410_v35 = vpop.f32.mrf.mxu1 }
 0x1ae   :  { %v355_v36 = vmul.f32 -1.442695, %v199_v34 }
 0x1af   :  { %v201_v37 = vpop.f32.mrf.mxu1 }
 0x1b0   :  { %455 = vpow2.f32 %v355_v36 }
 0x1b1   :  { %v411_v38 = vpop.f32.mrf.mxu1 }
 0x1bd   :  { %v456_v39 = vpop.eup %455 }
 0x1be   :  { %v207_v40 = vadd.f32 1.0, %v456_v39 }
 0x1c0   :  { %457 = vrcp.f32 %v207_v40 }
 0x1cd   :  { %v458_v41 = vpop.eup %457 }
 0x1ce   :  { %v210_v42 = vpack.c.bf16 %v458_v41, %v458_v41 }
 0x1d0   :  { %429 = vmatmul.mubr.bf16.vlgmr.msra.gmra.mxu0 %v210_v42 }
 0x290   :  { %v316_v44 = vpop.f32.mrf.mxu0 }
 0x291   :  { %v317_v45 = vadd.f32 %v356_v43, %v316_v44 }
 0x292   :  { %v430_v46 = vpop.f32.mrf.mxu0 }
 0x293   :  { %v365_v47 = vmul.f32 -1.442695, %v317_v45 }
 0x294   :  { %v319_v48 = vpop.f32.mrf.mxu0 }
 0x295   :  { %459 = vpow2.f32 %v365_v47 }
 0x296   :  { %v431_v49 = vpop.f32.mrf.mxu0 }
 0x2a2   :  { %v460_v50 = vpop.eup %459 }
 0x2a3   :  { %v325_v51 = vadd.f32 1.0, %v460_v50 }
 0x2a5   :  { %461 = vrcp.f32 %v325_v51 }
 0x2b2   :  { %v462_v52 = vpop.eup %461 }
 0x2b3   :  { %328 = vst [vmem:[#allocation2] sm:$0xff] %v462_v52 }
 0x2b4   :  { %474 = shalt.err (!%p471_p4)
}
 0x2b5   :  { %338 = dma.vmem_to_hbm [thread:$0]  %s336_s13, 128, %s621_s7, [#allocation3]  }
 0x2b6   :  { %483 = dma.done.wait [#allocation3], 128  }
 0x2b7   :  { %484 = vsyncadd [#allocation3], 4294967168 }
 0x2b8   :  { %342 = vsyncpa [#allocation3], 1 }

// kernel: decoder_forward.1
= control target key start
LH: loop header
LB: loop body
LE: loop exit
PB: predicated region body
PF: predicated region fallthrough
CT: control target
= control target key end

     0   :  { %vm42_vm0 = vcmask 1043456   ;;  %v485_v2 = vmov 0.0   ;;  %vm486_vm1 = vmmov 0   ;;  %vm38_vm2 = vcmask 64512   ;;  %s614_s0 = inlined_call_operand.vmem [shape: f32[8,8], index: 0, kind: input, shape index: {}]   ;;  %s615_s1 = inlined_call_operand.vmem [shape: bf16[8,128], index: 1, kind: input, shape index: {}]   ;;  %s616_s2 = inlined_call_operand.vmem [shape: f32[1,128], index: 2, kind: input, shape index: {}]   ;;  %s617_s3 = inlined_call_operand.vmem [shape: bf16[128,128], index: 3, kind: input, shape index: {}]   ;;  %s618_s4 = inlined_call_operand.vmem [shape: f32[1,128], index: 4, kind: input, shape index: {}]   ;;  %s619_s5 = inlined_call_operand.vmem [shape: bf16[128,128], index: 5, kind: input, shape index: {}]   ;;  %s620_s6 = inlined_call_operand.vmem [shape: f32[1,128], index: 6, kind: input, shape index: {}]   ;;  %s621_s7 = inlined_call_operand.hbm [shape: f32[8,128], index: 7, kind: output, shape index: {}]  }
   0x1   :  { %v30_v0 = vld [vmem:[%s615_s1] sm:$0xf]  ;;  %386 = vmatprep.subr.bf16.mxu0 %v485_v2  ;;  %388 = vmatprep.mubr.msk.bf16.mxu0 %vm486_vm1, %v485_v2 }
   0x2   :  { %v28_v1 = vld [vmem:[%s614_s0] sm:$0xff]  ;;  %v44_v3 = vsel %vm42_vm0, %v30_v0, 0  ;;  %392 = vmatprep.subr.bf16.mxu1 %v485_v2  ;;  %408 = vmatprep.mubr.msk.bf16.mxu1 %vm486_vm1, %v485_v2 }
   0x3   :  { %v29_v4 = vpack.c.bf16 %v28_v1, %v28_v1  ;;  %387 = vmatpush3.bf16.msra.mxu0 %v44_v3 }
   0x4   :  { %412 = vmatprep.subr.bf16.mxu0 %v485_v2 }
   0x6   :  { %389 = vmatmul.mubr.msk.bf16.vlgmr.msra.gmra.mxu0 %vm38_vm2, %v29_v4 }
   0x7   :  { %428 = vmatprep.mubr.msk.bf16.mxu0 %vm486_vm1, %v485_v2 }
   0x8   :  { %12 = vsyncpa [#allocation3], 0  ;;  %v435_v5 = vld [vmem:[%s617_s3 + $0x38] sm:$0xff]   ;;  %v436_v6 = vld [vmem:[%s617_s3 + $0x30] sm:$0xff]  }
   0x9   :  { %393 = vmatpush3.bf16.msra.mxu1 %v435_v5  ;;  %v437_v7 = vld [vmem:[%s617_s3 + $0x28] sm:$0xff]   ;;  %v438_v8 = vld [vmem:[%s617_s3 + $0x20] sm:$0xff]   ;;  %v439_v9 = vld [vmem:[%s617_s3 + $0x18] sm:$0xff]  }
   0xa   :  { %394 = vmatprep.subr.bf16.mxu1 %v485_v2  ;;  %v440_v10 = vld [vmem:[%s617_s3 + $0x10] sm:$0xff]   ;;  %v441_v11 = vld [vmem:[%s617_s3 + $0x8] sm:$0xff]   ;;  %v442_v12 = vld [vmem:[%s617_s3] sm:$0xff]  }
   0xb   :  { %v343_v13 = vld [vmem:[%s616_s2] ss:$0 sm:$0xff]  ;;  %v443_v24 = vld [vmem:[%s619_s5 + $0x38] sm:$0xff]   ;;  %v444_v25 = vld [vmem:[%s619_s5 + $0x30] sm:$0xff]  }
   0xc   :  { %413 = vmatpush3.bf16.msra.mxu0 %v443_v24  ;;  %v445_v26 = vld [vmem:[%s619_s5 + $0x28] sm:$0xff]   ;;  %v446_v27 = vld [vmem:[%s619_s5 + $0x20] sm:$0xff]   ;;  %v447_v28 = vld [vmem:[%s619_s5 + $0x18] sm:$0xff]  }
   0xd   :  { %395 = vmatpush3.bf16.msra.mxu1 %v436_v6  ;;  %414 = vmatprep.subr.bf16.mxu0 %v485_v2  ;;  %v448_v29 = vld [vmem:[%s619_s5 + $0x10] sm:$0xff]   ;;  %v449_v30 = vld [vmem:[%s619_s5 + $0x8] sm:$0xff]   ;;  %v450_v31 = vld [vmem:[%s619_s5] sm:$0xff]  }
   0xe   :  { %396 = vmatprep.subr.bf16.mxu1 %v485_v2  ;;  %v346_v32 = vld [vmem:[%s618_s4] ss:$0 sm:$0xff]  ;;  %s487_s4 = smov [#allocation2]  }
   0xf   :  { %v356_v43 = vld [vmem:[%s620_s6] ss:$0 sm:$0xff]  ;;  %s335_s13 = sshll.u32 %s487_s4, 4  ;;  %s336_s13 = int_to_ptr.vmem [resolvable:$true] %s335_s13 }
  0x10   :  { %415 = vmatpush3.bf16.msra.mxu0 %v444_v25  ;;  %s463_s14 = scalar_lea.vmem %s336_s13, 128  ;;  %p468_p1 = scmp.lt.s32.totalorder %s336_s13, %s336_s13 }
  0x11   :  { %397 = vmatpush3.bf16.msra.mxu1 %v437_v7  ;;  %416 = vmatprep.subr.bf16.mxu0 %v485_v2  ;;  %p464_p0 = scmp.ne.s32.totalorder %s336_s13, %s463_s14  ;;  %p469_p2 = scmp.lt.s32.totalorder %s463_s14, %s463_s14 }
  0x12   :  { %398 = vmatprep.subr.bf16.mxu1 %v485_v2 }
  0x13   :  { %p470_p3 = por %p469_p2, %p468_p1 }
  0x14   :  { %417 = vmatpush3.bf16.msra.mxu0 %v445_v26 }
  0x15   :  { %399 = vmatpush3.bf16.msra.mxu1 %v438_v8  ;;  %418 = vmatprep.subr.bf16.mxu0 %v485_v2  ;;  %p471_p4 = pnand %p470_p3, %p464_p0 }
  0x16   :  { %400 = vmatprep.subr.bf16.mxu1 %v485_v2 }
  0x18   :  { %419 = vmatpush3.bf16.msra.mxu0 %v446_v27 }
  0x19   :  { %401 = vmatpush3.bf16.msra.mxu1 %v439_v9  ;;  %420 = vmatprep.subr.bf16.mxu0 %v485_v2 }
  0x1a   :  { %402 = vmatprep.subr.bf16.mxu1 %v485_v2 }
  0x1c   :  { %421 = vmatpush3.bf16.msra.mxu0 %v447_v28 }
  0x1d   :  { %403 = vmatpush3.bf16.msra.mxu1 %v440_v10  ;;  %422 = vmatprep.subr.bf16.mxu0 %v485_v2 }
  0x1e   :  { %404 = vmatprep.subr.bf16.mxu1 %v485_v2 }
  0x20   :  { %423 = vmatpush3.bf16.msra.mxu0 %v448_v29 }
  0x21   :  { %405 = vmatpush3.bf16.msra.mxu1 %v441_v11  ;;  %424 = vmatprep.subr.bf16.mxu0 %v485_v2 }
  0x22   :  { %406 = vmatprep.subr.bf16.mxu1 %v485_v2 }
  0x24   :  { %425 = vmatpush3.bf16.msra.mxu0 %v449_v30 }
  0x25   :  { %407 = vmatpush3.bf16.msra.mxu1 %v442_v12  ;;  %426 = vmatprep.subr.bf16.mxu0 %v485_v2 }
  0x28   :  { %427 = vmatpush3.bf16.msra.mxu0 %v450_v31 }
  0xc6   :  { %v80_v14 = vpop.f32.mrf.mxu0 }
  0xc7   :  { %v81_v15 = vadd.f32 %v343_v13, %v80_v14 }
  0xc8   :  { %v390_v16 = vpop.f32.mrf.mxu0 }
  0xc9   :  { %v345_v17 = vmul.f32 -1.442695, %v81_v15 }
  0xca   :  { %v83_v18 = vpop.f32.mrf.mxu0 }
  0xcb   :  { %451 = vpow2.f32 %v345_v17 }
  0xcc   :  { %v391_v19 = vpop.f32.mrf.mxu0 }
  0xd8   :  { %v452_v20 = vpop.eup %451 }
  0xd9   :  { %v89_v21 = vadd.f32 1.0, %v452_v20 }
  0xdb   :  { %453 = vrcp.f32 %v89_v21 }
  0xe8   :  { %v454_v22 = vpop.eup %453 }
  0xe9   :  { %v92_v23 = vpack.c.bf16 %v454_v22, %v454_v22 }
  0xeb   :  { %409 = vmatmul.mubr.bf16.vlgmr.msra.gmra.mxu1 %v92_v23 }
 0x1ab   :  { %v198_v33 = vpop.f32.mrf.mxu1 }
 0x1ac   :  { %v199_v34 = vadd.f32 %v346_v32, %v198_v33 }
 0x1ad   :  { %v410_v35 = vpop.f32.mrf.mxu1 }
 0x1ae   :  { %v355_v36 = vmul.f32 -1.442695, %v199_v34 }
 0x1af   :  { %v201_v37 = vpop.f32.mrf.mxu1 }
 0x1b0   :  { %455 = vpow2.f32 %v355_v36 }
 0x1b1   :  { %v411_v38 = vpop.f32.mrf.mxu1 }
 0x1bd   :  { %v456_v39 = vpop.eup %455 }
 0x1be   :  { %v207_v40 = vadd.f32 1.0, %v456_v39 }
 0x1c0   :  { %457 = vrcp.f32 %v207_v40 }
 0x1cd   :  { %v458_v41 = vpop.eup %457 }
 0x1ce   :  { %v210_v42 = vpack.c.bf16 %v458_v41, %v458_v41 }
 0x1d0   :  { %429 = vmatmul.mubr.bf16.vlgmr.msra.gmra.mxu0 %v210_v42 }
 0x290   :  { %v316_v44 = vpop.f32.mrf.mxu0 }
 0x291   :  { %v317_v45 = vadd.f32 %v356_v43, %v316_v44 }
 0x292   :  { %v430_v46 = vpop.f32.mrf.mxu0 }
 0x293   :  { %v365_v47 = vmul.f32 -1.442695, %v317_v45 }
 0x294   :  { %v319_v48 = vpop.f32.mrf.mxu0 }
 0x295   :  { %459 = vpow2.f32 %v365_v47 }
 0x296   :  { %v431_v49 = vpop.f32.mrf.mxu0 }
 0x2a2   :  { %v460_v50 = vpop.eup %459 }
 0x2a3   :  { %v325_v51 = vadd.f32 1.0, %v460_v50 }
 0x2a5   :  { %461 = vrcp.f32 %v325_v51 }
 0x2b2   :  { %v462_v52 = vpop.eup %461 }
 0x2b3   :  { %328 = vst [vmem:[#allocation2] sm:$0xff] %v462_v52 }
 0x2b4   :  { %474 = shalt.err (!%p471_p4)
}
 0x2b5   :  { %338 = dma.vmem_to_hbm [thread:$0]  %s336_s13, 128, %s621_s7, [#allocation3]  }
 0x2b6   :  { %483 = dma.done.wait [#allocation3], 128  }
 0x2b7   :  { %484 = vsyncadd [#allocation3], 4294967168 }
 0x2b8   :  { %342 = vsyncpa [#allocation3], 1 }

</bundles_post_ra>
